<compile_context>
chip_gen: v6e
topology: v6e:2x2x1
jax: 0.10.0
libtpu: 0.0.40
codegen_flags: <defaults>
</compile_context>

<pallas_src>
import functools

import jax
import jax.numpy as jnp
from jax.experimental import pallas as pl
from jax.experimental.pallas import tpu as pltpu

IN_FEATURES = 10
OUT_FEATURES = 20


def _linear_sub_relu_kernel(x_ref, wt_ref, bo_ref, o_ref):
    # x_ref:  (bt, IN)
    # wt_ref: (IN, OUT)   (PyTorch weight, pre-transposed once at init)
    # bo_ref: (1, OUT)    (pre-combined bias - other)
    # o_ref:  (bt, OUT)
    y = jnp.dot(x_ref[...], wt_ref[...], preferred_element_type=jnp.float32)
    y = y + bo_ref[...]
    o_ref[...] = jnp.maximum(y, 0.0).astype(o_ref.dtype)


def _round_up(x, m):
    return ((x + m - 1) // m) * m


@functools.partial(jax.jit, static_argnames=("block_b",))
def linear_sub_relu(x, wt, bo, *, block_b=8192):
    """x: (B, IN); wt: (IN, OUT) pre-transposed; bo: (1, OUT) = bias - other."""
    B, IN = x.shape
    OUT = wt.shape[1]

    if B <= 8:
        # Tiny batch: single block whose shape equals the full array dims
        # (legal even when B is not a sublane multiple; no padding needed).
        bt = B
    else:
        # Aim for >= 2 grid blocks so v7x can shard the batch axis across both
        # TensorCores' HBM paths; cap at block_b rows. At bt=8192 the
        # double-buffered VMEM footprint is ~2.5 MiB, so no vmem_limit override
        # is needed on any generation (v5e/v6e/v7x).
        bt = min(block_b, _round_up(pl.cdiv(B, 2), 8))

    grid = (pl.cdiv(B, bt),)

    # No input padding and no output slicing: a partial last block only produces
    # garbage in its out-of-bounds rows, and those writes are clipped by Pallas.
    return pl.pallas_call(
        _linear_sub_relu_kernel,
        out_shape=jax.ShapeDtypeStruct((B, OUT), jnp.float32),
        grid_spec=pltpu.PrefetchScalarGridSpec(
            num_scalar_prefetch=0,
            grid=grid,
            in_specs=[
                pl.BlockSpec((bt, IN), lambda i: (i, 0)),
                pl.BlockSpec((IN, OUT), lambda i: (0, 0)),
                pl.BlockSpec((1, OUT), lambda i: (0, 0)),
            ],
            out_specs=pl.BlockSpec((bt, OUT), lambda i: (i, 0)),
        ),
        compiler_params=pltpu.CompilerParams(
            dimension_semantics=("parallel",),
        ),
    )(x, wt, bo)


def reference(x, weight, bias, other):
    v1 = x @ weight.T + bias
    v1 = v1 - other
    return jnp.maximum(v1, 0.0)


if __name__ == "__main__":
    key = jax.random.PRNGKey(0)
    k_x, k_w, k_b, k_o, k_xb = jax.random.split(key, 5)

    B, IN, OUT = 1, IN_FEATURES, OUT_FEATURES
    x = jax.random.normal(k_x, (B, IN), dtype=jnp.float32)

    # Deterministic parameter init (Kaiming-uniform-like bounds, same as nn.Linear).
    bound = 1.0 / (IN ** 0.5)
    weight = jax.random.uniform(k_w, (OUT, IN), minval=-bound, maxval=bound,
                                dtype=jnp.float32)
    bias = jax.random.uniform(k_b, (OUT,), minval=-bound, maxval=bound,
                              dtype=jnp.float32)
    other = jax.random.normal(k_o, (OUT,), dtype=jnp.float32)

    # Parameter preprocessing done ONCE at init time (not in the per-call path):
    wt = jnp.asarray(weight.T)                       # (IN, OUT)
    bo = (bias - other).reshape(1, OUT)              # folded bias - other

    # Module-spec shape: (1, 10) input.
    out = jax.block_until_ready(linear_sub_relu(x, wt, bo))
    ref = reference(x, weight, bias, other)
    assert out.shape == (B, OUT)
    assert jnp.allclose(out, ref, atol=1e-5, rtol=1e-5), "mismatch vs reference (B=1)"

    # Batched check exercising the multi-block grid + ragged (partial) last tile:
    # B=24 -> bt=16 -> 2 blocks, second block clipped to 8 valid rows.
    xb = jax.random.normal(k_xb, (24, IN), dtype=jnp.float32)
    outb = jax.block_until_ready(linear_sub_relu(xb, wt, bo))
    refb = reference(xb, weight, bias, other)
    assert outb.shape == (24, OUT)
    assert jnp.allclose(outb, refb, atol=1e-5, rtol=1e-5), "mismatch vs reference (B=24)"

    print("KERNEL_OK")
</pallas_src>

<mosaic_0001>
module attributes {stable_mosaic.version = 11 : i64} {
  func.func @_linear_sub_relu_kernel(%arg0: i32, %arg1: memref<1x10xf32, #tpu.memory_space<vmem>>, %arg2: memref<10x20xf32, #tpu.memory_space<vmem>>, %arg3: memref<1x20xf32, #tpu.memory_space<vmem>>, %arg4: memref<1x20xf32, #tpu.memory_space<vmem>>) attributes {dimension_semantics = [#tpu.dimension_semantics<parallel>], iteration_bounds = array<i64: 1>, scalar_prefetch = 0 : i64, scratch_operands = 0 : i64, tpu.core_type = #tpu.core_type<tc>, window_params = [{transform_indices = @transform_0, window_bounds = array<i64: 1, 10>}, {pipeline_mode = #tpu.pipeline_mode<synchronous>, transform_indices = @transform_1, window_bounds = array<i64: 10, 20>}, {pipeline_mode = #tpu.pipeline_mode<synchronous>, transform_indices = @transform_2, window_bounds = array<i64: 1, 20>}, {transform_indices = @transform_3, window_bounds = array<i64: 1, 20>}]} {
    %c0 = arith.constant 0 : index
    %c0_0 = arith.constant 0 : index
    %0 = vector.load %arg1[%c0, %c0_0] : memref<1x10xf32, #tpu.memory_space<vmem>>, vector<1x10xf32>
    %c0_1 = arith.constant 0 : index
    %c0_2 = arith.constant 0 : index
    %1 = vector.load %arg2[%c0_1, %c0_2] : memref<10x20xf32, #tpu.memory_space<vmem>>, vector<10x20xf32>
    %cst = arith.constant dense<0.000000e+00> : vector<1x20xf32>
    %2 = tpu.matmul %0, %1, %cst {dimension_numbers = #tpu.dot_dimension_numbers<[1], [0], [0], [1], [0, 0, 1, 1], [], []>} : vector<1x10xf32>, vector<10x20xf32>, vector<1x20xf32> -> vector<1x20xf32>
    %c0_3 = arith.constant 0 : index
    %c0_4 = arith.constant 0 : index
    %3 = vector.load %arg3[%c0_3, %c0_4] : memref<1x20xf32, #tpu.memory_space<vmem>>, vector<1x20xf32>
    %4 = arith.addf %2, %3 : vector<1x20xf32>
    %cst_5 = arith.constant 0.000000e+00 : f32
    %5 = vector.broadcast %cst_5 : f32 to vector<1x20xf32>
    %6 = arith.maximumf %4, %5 : vector<1x20xf32>
    %c0_6 = arith.constant 0 : index
    %c0_7 = arith.constant 0 : index
    %7 = vector.load %arg4[%c0_6, %c0_7] : memref<1x20xf32, #tpu.memory_space<vmem>>, vector<1x20xf32>
    tpu.vector_store %arg4[%c0_6, %c0_7], %6 {strides = array<i32>} : memref<1x20xf32, #tpu.memory_space<vmem>>, vector<1x20xf32>,
    return
  }
  func.func @transform_0(%arg0: i32) -> (i32, i32) {
    %c0_i32 = arith.constant 0 : i32
    %c0_i32_0 = arith.constant 0 : i32
    return %arg0, %c0_i32 : i32, i32
  }
  func.func @transform_1(%arg0: i32) -> (i32, i32) {
    %c0_i32 = arith.constant 0 : i32
    %c0_i32_0 = arith.constant 0 : i32
    %c0_i32_1 = arith.constant 0 : i32
    return %c0_i32, %c0_i32_0 : i32, i32
  }
  func.func @transform_2(%arg0: i32) -> (i32, i32) {
    %c0_i32 = arith.constant 0 : i32
    %c0_i32_0 = arith.constant 0 : i32
    %c0_i32_1 = arith.constant 0 : i32
    return %c0_i32, %c0_i32_0 : i32, i32
  }
  func.func @transform_3(%arg0: i32) -> (i32, i32) {
    %c0_i32 = arith.constant 0 : i32
    %c0_i32_0 = arith.constant 0 : i32
    return %arg0, %c0_i32 : i32, i32
  }
}

</mosaic_0001>

<bundles_post_ra>
// kernel: linear_sub_relu.1
= control target key start
LH: loop header
LB: loop body
LE: loop exit
PB: predicated region body
PF: predicated region fallthrough
CT: control target
= control target key end

     0   :  { %8 = vsyncpa [#allocation3], 0  ;;  %s266_s0 = inlined_call_operand.hbm [shape: f32[1,10], index: 0, kind: input, shape index: {}]   ;;  %s267_s1 = inlined_call_operand.hbm [shape: f32[10,20], index: 1, kind: input, shape index: {}]   ;;  %s268_s2 = inlined_call_operand.vmem [shape: f32[1,20], index: 2, kind: input, shape index: {}]   ;;  %s269_s3 = inlined_call_operand.hbm [shape: f32[1,20], index: 3, kind: output, shape index: {}]  }
   0x1   :  { %9 = vsyncpa [#allocation6], 0 }
   0x2   :  { %10 = vsyncpa [#allocation4], 0  ;;  %s227_s12 = smov [#allocation2]   ;;  %s228_s14 = smov [#allocation5]  }
   0x3   :  { %s17_s13 = sshll.u32 %s227_s12, 4  ;;  %s26_s15 = sshll.u32 %s228_s14, 4  ;;  %s18_s13 = int_to_ptr.vmem [resolvable:$true] %s17_s13  ;;  %s27_s15 = int_to_ptr.vmem [resolvable:$true] %s26_s15 }
   0x4   :  { %s169_s16 = scalar_lea.vmem %s18_s13, 16  ;;  %s173_s17 = scalar_lea.vmem %s18_s13, 32 }
   0x5   :  { %p170_p0 = scmp.ne.s32.totalorder %s18_s13, %s169_s16  ;;  %p174_p1 = scmp.lt.s32.totalorder %s18_s13, %s18_s13 }
   0x6   :  { %p175_p2 = scmp.lt.s32.totalorder %s173_s17, %s169_s16 }
   0x8   :  { %p176_p3 = por %p175_p2, %p174_p1 }
   0xa   :  { %p177_p4 = pnand %p176_p3, %p170_p0 }
   0xc   :  { %180 = shalt.err (!%p177_p4)
}
   0xd   :  { %20 = dma.hbm_to_vmem [thread:$0]  %s266_s0, 16, %s18_s13, [#allocation3]  }
   0xe   :  { %s189_s20 = scalar_lea.vmem %s27_s15, 256  ;;  %p194_p6 = scmp.lt.s32.totalorder %s27_s15, %s27_s15 }
   0xf   :  { %p190_p5 = scmp.ne.s32.totalorder %s27_s15, %s189_s20  ;;  %p195_p7 = scmp.lt.s32.totalorder %s189_s20, %s189_s20 }
  0x11   :  { %p196_p8 = por %p195_p7, %p194_p6 }
  0x13   :  { %p197_p9 = pnand %p196_p8, %p190_p5 }
  0x15   :  { %200 = shalt.err (!%p197_p9)
}
  0x16   :  { %s229_s21 = smov 128   ;;  %s230_s22 = smov 8  }
  0x17   :  { %32 = dma.hbm_to_vmem [thread:$0]  %s267_s1, 256, %s27_s15, [#allocation6], %s229_s21, %s229_s21, %s230_s22  }
  0x18   :  { %221 = dma.done.wait [#allocation3], 16  }
  0x19   :  { %222 = vsyncadd [#allocation3], 4294967280 }
  0x1a   :  { %223 = dma.done.wait [#allocation6], 256  }
  0x1b   :  { %224 = vsyncadd [#allocation6], 4294967040  ;;  %v231_v0 = vmov 0.0   ;;  %vm232_vm0 = vmmov 0   ;;  %vm49_vm1 = vcmask 1041408   ;;  %v42_v2 = vld [vmem:[#allocation5] sm:$0xff] }
  0x1c   :  { %147 = vmatprep.subr.mxu0 %v231_v0  ;;  %151 = vmatprep.mubr.msk.f32.mxu0 %vm232_vm0, %v231_v0  ;;  %v43_v1 = vld [vmem:[#allocation5 + $0x8] sm:$0x3]  ;;  %v41_v3 = vld [vmem:[#allocation2] sm:$0x1]  ;;  %vm45_vm2 = vcmask 80896   ;;  %s233_s1 = smov [#allocation7]  }
  0x1d   :  { %148 = vmatpush3.msk.msra.mxu0 %vm49_vm1, %v43_v1  ;;  %v44_v4 = vld [vmem:[%s268_s2] sm:$0x1]  ;;  %s132_s26 = sshll.u32 %s233_s1, 4  ;;  %vm124_vm3 = vcmask 155648   ;;  %s133_s26 = int_to_ptr.vmem [resolvable:$true] %s132_s26 }
  0x1e   :  { %149 = vmatprep.subr.mxu0 %v231_v0  ;;  %s201_s27 = scalar_lea.vmem %s133_s26, 16  ;;  %s205_s28 = scalar_lea.vmem %s133_s26, 32 }
  0x1f   :  { %150 = vmatpush3.msra.mxu0 %v42_v2  ;;  %p202_p10 = scmp.ne.s32.totalorder %s133_s26, %s201_s27  ;;  %p206_p11 = scmp.lt.s32.totalorder %s133_s26, %s133_s26 }
  0x20   :  { %152 = vmatmul.mubr.msk.f32.vlgmr.msra.gmra.mxu0 %vm45_vm2, %v41_v3  ;;  %p207_p12 = scmp.lt.s32.totalorder %s205_s28, %s201_s27 }
  0x22   :  { %p208_p13 = por %p207_p12, %p206_p11 }
  0x24   :  { %p209_p0 = pnand %p208_p13, %p202_p10 }
  0xe0   :  { %v119_v5 = vpop.f32.mrf.mxu0 }
  0xe1   :  { %v120_v6 = vadd.f32 %v119_v5, %v44_v4 }
  0xe2   :  { %v153_v7 = vpop.f32.mrf.mxu0 }
  0xe3   :  { %v123_v8 = vmax.f32 %v120_v6, 0.0 }
  0xe5   :  { %125 = vst.msk [vmem:[#allocation7] sm:$0x1] %vm124_vm3, %v123_v8 }
  0xe6   :  { %212 = shalt.err (!%p209_p0)
}
  0xe7   :  { %135 = dma.vmem_to_hbm [thread:$0]  %s133_s26, 16, %s269_s3, [#allocation4]  }
  0xe8   :  { %225 = dma.done.wait [#allocation4], 16  }
  0xe9   :  { %226 = vsyncadd [#allocation4], 4294967280 }
  0xea   :  { %139 = vsyncpa [#allocation3], 1 }
  0xeb   :  { %140 = vsyncpa [#allocation6], 1 }
  0xec   :  { %141 = vsyncpa [#allocation4], 1 }

</bundles_post_ra>
